<compile_context>
chip_gen: v5e
topology: v5e:2x2
jax: 0.10.0
libtpu: 0.0.40
codegen_flags: <defaults>
</compile_context>

<pallas_src>
import functools

import jax
import jax.numpy as jnp
from jax.experimental import pallas as pl
from jax.experimental.pallas import tpu as pltpu

LANE = 128        # lane width: feature-dim padding target
MAX_TILE_B = 256  # cap on batch rows per grid step
NEG_INF = -1e30   # additive mask value for padded softmax lanes


def _round_up(n, m):
    return (n + m - 1) // m * m


# ----------------------------------------------------------------------------
# Fused kernel: (linear + ReLU) * n_layers  ->  masked softmax over dim=1
# ----------------------------------------------------------------------------
def _fused_mlp_softmax_kernel(*refs, n_layers):
    """refs = (x_ref, w0, b0, ..., w_{L-1}, b_{L-1}, mask_ref, out_ref).

    x_ref  : [tile_b, D0_pad]      f32
    w_l    : [Dl_pad, Dl+1_pad]    bf16 (pre-transposed (in,out), zero padded)
    b_l    : [1, Dl+1_pad]         f32  (zero padded)
    mask   : [1, Dlast_pad]        f32  (0 on valid lanes, -1e30 on pad lanes)
    out    : [tile_b, Dlast_pad]   f32  (lane-dense; pad lanes sliced off
                                         by the wrapper)
    """
    x_ref = refs[0]
    mask_ref = refs[-2]
    out_ref = refs[-1]
    wb_refs = refs[1:-2]

    x = x_ref[...]                                      # f32 activations
    for l in range(n_layers):                           # static unroll
        w = wb_refs[2 * l][...]                         # bf16 weights
        b = wb_refs[2 * l + 1][...]                     # f32 bias
        acc = jnp.dot(x.astype(jnp.bfloat16), w,
                      preferred_element_type=jnp.float32)
        x = jnp.maximum(acc + b, 0.0)                   # bias + ReLU in f32

    # Kill padded output lanes (exp underflows to exactly 0).
    x = x + mask_ref[...]

    # Numerically stable row-wise softmax (dim=1), exact normalization.
    m = jnp.max(x, axis=1, keepdims=True)
    e = jnp.exp(x - m)
    denom = jnp.sum(e, axis=1, keepdims=True)
    out_ref[...] = (e / denom).astype(out_ref.dtype)


# ----------------------------------------------------------------------------
# One-time parameter preparation: pad + cast, build softmax mask
# ----------------------------------------------------------------------------
def prepare_params(params):
    """params: list of (w:(Din,Dout) f32, b:(Dout,) f32).

    Returns (prepared, mask, dims, pdims) where prepared holds bf16 weights
    padded to 128-lane multiples and f32 padded biases. Done once, outside
    the jitted forward.
    """
    dims = tuple([params[0][0].shape[0]] + [w.shape[1] for (w, _) in params])
    pdims = tuple(_round_up(d, LANE) for d in dims)

    prepared = []
    for l, (w, b) in enumerate(params):
        din, dout = w.shape
        wp = (jnp.zeros((pdims[l], pdims[l + 1]), jnp.bfloat16)
              .at[:din, :dout].set(w.astype(jnp.bfloat16)))
        bp = (jnp.zeros((1, pdims[l + 1]), jnp.float32)
              .at[0, :dout].set(b.astype(jnp.float32)))
        prepared.append((wp, bp))
    prepared = tuple(prepared)

    mask = (jnp.full((1, pdims[-1]), NEG_INF, jnp.float32)
            .at[0, :dims[-1]].set(0.0))
    return prepared, mask, dims, pdims


# ----------------------------------------------------------------------------
# Wrapper: pad input, tile the batch, single pallas_call
# ----------------------------------------------------------------------------
def fused_mlp_softmax(x, prepared, mask, dims, pdims):
    B = x.shape[0]
    n_layers = len(prepared)
    d_last, d_last_pad = dims[-1], pdims[-1]

    # Large batch tile (multiple of 16 for bf16 sublane packing, capped).
    tile_b = min(_round_up(max(B, 1), 16), MAX_TILE_B)
    bp_rows = _round_up(B, tile_b)

    # Pad batch to a multiple of the tile and features to 128 lanes.
    if bp_rows == B and pdims[0] == dims[0]:
        xp = x.astype(jnp.float32)
    else:
        xp = (jnp.zeros((bp_rows, pdims[0]), jnp.float32)
              .at[:B, :dims[0]].set(x.astype(jnp.float32)))

    resident = pl.Buffered(1)   # grid-invariant operands: single buffer

    flat_inputs = [xp]
    in_specs = [pl.BlockSpec((tile_b, pdims[0]), lambda i: (i, 0))]
    for l, (wp, bpad) in enumerate(prepared):
        flat_inputs += [wp, bpad]
        in_specs += [
            pl.BlockSpec((pdims[l], pdims[l + 1]), lambda i: (0, 0),
                         pipeline_mode=resident),
            pl.BlockSpec((1, pdims[l + 1]), lambda i: (0, 0),
                         pipeline_mode=resident),
        ]
    flat_inputs.append(mask)
    in_specs.append(pl.BlockSpec((1, d_last_pad), lambda i: (0, 0),
                                 pipeline_mode=resident))

    # Advisory cost estimate for the XLA scheduler.
    weight_bytes = sum(int(w.size) * 2 + int(b.size) * 4 for (w, b) in prepared)
    flops = 2 * bp_rows * sum(pdims[l] * pdims[l + 1] for l in range(n_layers))
    transcendentals = bp_rows * d_last_pad
    bytes_accessed = (int(xp.size) * 4 + weight_bytes + int(mask.size) * 4
                      + bp_rows * d_last_pad * 4)

    # VMEM budget: single-buffered weights + double-buffered act/out tiles.
    act_bytes = 2 * tile_b * pdims[0] * 4 + 2 * tile_b * d_last_pad * 4
    vmem_limit = min(max(2 * weight_bytes + 2 * act_bytes + (8 << 20),
                         32 << 20), 100 << 20)

    kernel = functools.partial(_fused_mlp_softmax_kernel, n_layers=n_layers)

    out_padded = pl.pallas_call(
        kernel,
        out_shape=jax.ShapeDtypeStruct((bp_rows, d_last_pad), jnp.float32),
        grid=(bp_rows // tile_b,),
        in_specs=in_specs,
        out_specs=pl.BlockSpec((tile_b, d_last_pad), lambda i: (i, 0)),
        compiler_params=pltpu.CompilerParams(
            dimension_semantics=("parallel",),
            vmem_limit_bytes=int(vmem_limit)),
        cost_estimate=pl.CostEstimate(
            flops=int(flops),
            transcendentals=int(transcendentals),
            bytes_accessed=int(bytes_accessed)),
    )(*flat_inputs)

    return out_padded[:B, :d_last]


@functools.partial(jax.jit, static_argnames=("dims", "pdims"))
def net_forward(x, prepared, mask, dims, pdims):
    return fused_mlp_softmax(x, prepared, mask, dims, pdims)


# ----------------------------------------------------------------------------
# Net: parameter init + pure-JAX reference
# ----------------------------------------------------------------------------
def init_params(key, layers_size):
    """Mimic nn.Linear default init (uniform +-1/sqrt(fan_in)).

    Weights are stored already transposed to (in, out) for the kernel.
    """
    params = []
    for i in range(len(layers_size) - 1):
        fan_in, fan_out = layers_size[i], layers_size[i + 1]
        key, kw, kb = jax.random.split(key, 3)
        bound = 1.0 / (fan_in ** 0.5)
        w = jax.random.uniform(kw, (fan_in, fan_out), jnp.float32,
                               minval=-bound, maxval=bound)
        b = jax.random.uniform(kb, (fan_out,), jnp.float32,
                               minval=-bound, maxval=bound)
        params.append((w, b))
    return params


def net_forward_ref(x, params):
    """Pure-JAX f32 reference for a sanity check."""
    for (w, b) in params:
        x = jnp.maximum(x @ w + b, 0.0)
    return jax.nn.softmax(x, axis=1)


# ----------------------------------------------------------------------------
if __name__ == "__main__":
    # Small shapes consistent with the module: MLP over [batch, features].
    layers_size = [32, 64, 128, 16]   # 3 Linear layers
    batch = 16                        # tile_b = 16 -> grid = (1,)

    key = jax.random.PRNGKey(0)
    key, kx = jax.random.split(key)
    x = jax.random.normal(kx, (batch, layers_size[0]), jnp.float32)

    params = init_params(jax.random.PRNGKey(0), layers_size)
    prepared, mask, dims, pdims = prepare_params(params)

    out = net_forward(x, prepared, mask, dims, pdims)
    out = jax.block_until_ready(out)

    ref = net_forward_ref(x, params)
    assert out.shape == (batch, layers_size[-1])
    # bf16 MXU operands -> compare with a tolerance covering the bf16 path.
    assert jnp.allclose(out, ref, atol=2e-2, rtol=2e-2), "mismatch vs reference"
    # Exact-divide softmax: rows sum to 1 to f32 precision.
    assert jnp.allclose(jnp.sum(out, axis=1), 1.0, atol=1e-4)

    print("KERNEL_OK")
</pallas_src>

<mosaic_0001>
module attributes {stable_mosaic.version = 11 : i64} {
  func.func @_fused_mlp_softmax_kernel(%arg0: i32, %arg1: memref<16x128xf32, #tpu.memory_space<vmem>>, %arg2: memref<128x128xbf16, #tpu.memory_space<vmem>>, %arg3: memref<1x128xf32, #tpu.memory_space<vmem>>, %arg4: memref<128x128xbf16, #tpu.memory_space<vmem>>, %arg5: memref<1x128xf32, #tpu.memory_space<vmem>>, %arg6: memref<128x128xbf16, #tpu.memory_space<vmem>>, %arg7: memref<1x128xf32, #tpu.memory_space<vmem>>, %arg8: memref<1x128xf32, #tpu.memory_space<vmem>>, %arg9: memref<16x128xf32, #tpu.memory_space<vmem>>) attributes {dimension_semantics = [#tpu.dimension_semantics<parallel>], iteration_bounds = array<i64: 1>, scalar_prefetch = 0 : i64, scratch_operands = 0 : i64, tpu.core_type = #tpu.core_type<tc>, window_params = [{transform_indices = @transform_0, window_bounds = array<i64: 16, 128>}, {pipeline_mode = #tpu.pipeline_mode<synchronous>, transform_indices = @transform_1, window_bounds = array<i64: 128, 128>}, {pipeline_mode = #tpu.pipeline_mode<synchronous>, transform_indices = @transform_2, window_bounds = array<i64: 1, 128>}, {pipeline_mode = #tpu.pipeline_mode<synchronous>, transform_indices = @transform_3, window_bounds = array<i64: 128, 128>}, {pipeline_mode = #tpu.pipeline_mode<synchronous>, transform_indices = @transform_4, window_bounds = array<i64: 1, 128>}, {pipeline_mode = #tpu.pipeline_mode<synchronous>, transform_indices = @transform_5, window_bounds = array<i64: 128, 128>}, {pipeline_mode = #tpu.pipeline_mode<synchronous>, transform_indices = @transform_6, window_bounds = array<i64: 1, 128>}, {pipeline_mode = #tpu.pipeline_mode<synchronous>, transform_indices = @transform_7, window_bounds = array<i64: 1, 128>}, {transform_indices = @transform_8, window_bounds = array<i64: 16, 128>}]} {
    %c0 = arith.constant 0 : index
    %c0_0 = arith.constant 0 : index
    %0 = vector.load %arg1[%c0, %c0_0] : memref<16x128xf32, #tpu.memory_space<vmem>>, vector<16x128xf32>
    %c0_1 = arith.constant 0 : index
    %c0_2 = arith.constant 0 : index
    %1 = vector.load %arg2[%c0_1, %c0_2] : memref<128x128xbf16, #tpu.memory_space<vmem>>, vector<128x128xbf16>
    %c0_3 = arith.constant 0 : index
    %c0_4 = arith.constant 0 : index
    %2 = vector.load %arg3[%c0_3, %c0_4] : memref<1x128xf32, #tpu.memory_space<vmem>>, vector<1x128xf32>
    %3 = arith.truncf %0 : vector<16x128xf32> to vector<16x128xbf16>
    %cst = arith.constant dense<0.000000e+00> : vector<16x128xf32>
    %4 = tpu.matmul %3, %1, %cst {dimension_numbers = #tpu.dot_dimension_numbers<[1], [0], [0], [1], [0, 0, 1, 1], [], []>} : vector<16x128xbf16>, vector<128x128xbf16>, vector<16x128xf32> -> vector<16x128xf32>
    %5 = vector.broadcast %2 : vector<1x128xf32> to vector<16x128xf32>
    %6 = arith.addf %4, %5 : vector<16x128xf32>
    %cst_5 = arith.constant 0.000000e+00 : f32
    %7 = vector.broadcast %cst_5 : f32 to vector<16x128xf32>
    %8 = arith.maximumf %6, %7 : vector<16x128xf32>
    %c0_6 = arith.constant 0 : index
    %c0_7 = arith.constant 0 : index
    %9 = vector.load %arg4[%c0_6, %c0_7] : memref<128x128xbf16, #tpu.memory_space<vmem>>, vector<128x128xbf16>
    %c0_8 = arith.constant 0 : index
    %c0_9 = arith.constant 0 : index
    %10 = vector.load %arg5[%c0_8, %c0_9] : memref<1x128xf32, #tpu.memory_space<vmem>>, vector<1x128xf32>
    %11 = arith.truncf %8 : vector<16x128xf32> to vector<16x128xbf16>
    %cst_10 = arith.constant dense<0.000000e+00> : vector<16x128xf32>
    %12 = tpu.matmul %11, %9, %cst_10 {dimension_numbers = #tpu.dot_dimension_numbers<[1], [0], [0], [1], [0, 0, 1, 1], [], []>} : vector<16x128xbf16>, vector<128x128xbf16>, vector<16x128xf32> -> vector<16x128xf32>
    %13 = vector.broadcast %10 : vector<1x128xf32> to vector<16x128xf32>
    %14 = arith.addf %12, %13 : vector<16x128xf32>
    %cst_11 = arith.constant 0.000000e+00 : f32
    %15 = vector.broadcast %cst_11 : f32 to vector<16x128xf32>
    %16 = arith.maximumf %14, %15 : vector<16x128xf32>
    %c0_12 = arith.constant 0 : index
    %c0_13 = arith.constant 0 : index
    %17 = vector.load %arg6[%c0_12, %c0_13] : memref<128x128xbf16, #tpu.memory_space<vmem>>, vector<128x128xbf16>
    %c0_14 = arith.constant 0 : index
    %c0_15 = arith.constant 0 : index
    %18 = vector.load %arg7[%c0_14, %c0_15] : memref<1x128xf32, #tpu.memory_space<vmem>>, vector<1x128xf32>
    %19 = arith.truncf %16 : vector<16x128xf32> to vector<16x128xbf16>
    %cst_16 = arith.constant dense<0.000000e+00> : vector<16x128xf32>
    %20 = tpu.matmul %19, %17, %cst_16 {dimension_numbers = #tpu.dot_dimension_numbers<[1], [0], [0], [1], [0, 0, 1, 1], [], []>} : vector<16x128xbf16>, vector<128x128xbf16>, vector<16x128xf32> -> vector<16x128xf32>
    %21 = vector.broadcast %18 : vector<1x128xf32> to vector<16x128xf32>
    %22 = arith.addf %20, %21 : vector<16x128xf32>
    %cst_17 = arith.constant 0.000000e+00 : f32
    %23 = vector.broadcast %cst_17 : f32 to vector<16x128xf32>
    %24 = arith.maximumf %22, %23 : vector<16x128xf32>
    %c0_18 = arith.constant 0 : index
    %c0_19 = arith.constant 0 : index
    %25 = vector.load %arg8[%c0_18, %c0_19] : memref<1x128xf32, #tpu.memory_space<vmem>>, vector<1x128xf32>
    %26 = vector.broadcast %25 : vector<1x128xf32> to vector<16x128xf32>
    %27 = arith.addf %24, %26 : vector<16x128xf32>
    %cst_20 = arith.constant dense<0xFF800000> : vector<16xf32>
    %28 = vector.multi_reduction <maximumf>, %27, %cst_20 [1] : vector<16x128xf32> to vector<16xf32>
    %29 = vector.shape_cast %28 : vector<16xf32> to vector<16x1xf32>
    %30 = vector.broadcast %29 : vector<16x1xf32> to vector<16x128xf32>
    %31 = arith.subf %27, %30 : vector<16x128xf32>
    %32 = math.exp %31 : vector<16x128xf32>
    %cst_21 = arith.constant dense<0.000000e+00> : vector<16xf32>
    %33 = vector.multi_reduction <add>, %32, %cst_21 [1] : vector<16x128xf32> to vector<16xf32>
    %34 = vector.shape_cast %33 : vector<16xf32> to vector<16x1xf32>
    %35 = vector.broadcast %34 : vector<16x1xf32> to vector<16x128xf32>
    %36 = arith.divf %32, %35 : vector<16x128xf32>
    %c0_22 = arith.constant 0 : index
    %c0_23 = arith.constant 0 : index
    %37 = vector.load %arg9[%c0_22, %c0_23] : memref<16x128xf32, #tpu.memory_space<vmem>>, vector<16x128xf32>
    tpu.vector_store %arg9[%c0_22, %c0_23], %36 {strides = array<i32>} : memref<16x128xf32, #tpu.memory_space<vmem>>, vector<16x128xf32>,
    return
  }
  func.func @transform_0(%arg0: i32) -> (i32, i32) {
    %c0_i32 = arith.constant 0 : i32
    %c0_i32_0 = arith.constant 0 : i32
    return %arg0, %c0_i32 : i32, i32
  }
  func.func @transform_1(%arg0: i32) -> (i32, i32) {
    %c0_i32 = arith.constant 0 : i32
    %c0_i32_0 = arith.constant 0 : i32
    %c0_i32_1 = arith.constant 0 : i32
    return %c0_i32, %c0_i32_0 : i32, i32
  }
  func.func @transform_2(%arg0: i32) -> (i32, i32) {
    %c0_i32 = arith.constant 0 : i32
    %c0_i32_0 = arith.constant 0 : i32
    %c0_i32_1 = arith.constant 0 : i32
    return %c0_i32, %c0_i32_0 : i32, i32
  }
  func.func @transform_3(%arg0: i32) -> (i32, i32) {
    %c0_i32 = arith.constant 0 : i32
    %c0_i32_0 = arith.constant 0 : i32
    %c0_i32_1 = arith.constant 0 : i32
    return %c0_i32, %c0_i32_0 : i32, i32
  }
  func.func @transform_4(%arg0: i32) -> (i32, i32) {
    %c0_i32 = arith.constant 0 : i32
    %c0_i32_0 = arith.constant 0 : i32
    %c0_i32_1 = arith.constant 0 : i32
    return %c0_i32, %c0_i32_0 : i32, i32
  }
  func.func @transform_5(%arg0: i32) -> (i32, i32) {
    %c0_i32 = arith.constant 0 : i32
    %c0_i32_0 = arith.constant 0 : i32
    %c0_i32_1 = arith.constant 0 : i32
    return %c0_i32, %c0_i32_0 : i32, i32
  }
  func.func @transform_6(%arg0: i32) -> (i32, i32) {
    %c0_i32 = arith.constant 0 : i32
    %c0_i32_0 = arith.constant 0 : i32
    %c0_i32_1 = arith.constant 0 : i32
    return %c0_i32, %c0_i32_0 : i32, i32
  }
  func.func @transform_7(%arg0: i32) -> (i32, i32) {
    %c0_i32 = arith.constant 0 : i32
    %c0_i32_0 = arith.constant 0 : i32
    %c0_i32_1 = arith.constant 0 : i32
    return %c0_i32, %c0_i32_0 : i32, i32
  }
  func.func @transform_8(%arg0: i32) -> (i32, i32) {
    %c0_i32 = arith.constant 0 : i32
    %c0_i32_0 = arith.constant 0 : i32
    return %arg0, %c0_i32 : i32, i32
  }
}

</mosaic_0001>

<bundles_post_ra>
// kernel: net_forward.1
= control target key start
LH: loop header
LB: loop body
LE: loop exit
PB: predicated region body
PF: predicated region fallthrough
CT: control target
= control target key end

     0   :  { %13 = vsyncpa [#allocation3], 0  ;;  %s711_s0 = inlined_call_operand.vmem [shape: f32[16,128], index: 0, kind: input, shape index: {}]   ;;  %s712_s1 = inlined_call_operand.vmem [shape: bf16[128,128], index: 1, kind: input, shape index: {}]   ;;  %s713_s2 = inlined_call_operand.vmem [shape: f32[1,128], index: 2, kind: input, shape index: {}]   ;;  %s714_s3 = inlined_call_operand.hbm [shape: bf16[128,128], index: 3, kind: input, shape index: {}]   ;;  %s715_s4 = inlined_call_operand.vmem [shape: f32[1,128], index: 4, kind: input, shape index: {}]   ;;  %s716_s5 = inlined_call_operand.hbm [shape: bf16[128,128], index: 5, kind: input, shape index: {}]   ;;  %s717_s6 = inlined_call_operand.vmem [shape: f32[1,128], index: 6, kind: input, shape index: {}]   ;;  %s718_s7 = inlined_call_operand.vmem [shape: f32[1,128], index: 7, kind: input, shape index: {}]   ;;  %s719_s8 = inlined_call_operand.hbm [shape: f32[16,128], index: 8, kind: output, shape index: {}]  }
   0x1   :  { %14 = vsyncpa [#allocation6], 0 }
   0x2   :  { %15 = vsyncpa [#allocation4], 0  ;;  %s26_s29 = sshll.u32 %s714_s3, 4  ;;  %s608_s30 = smov [#allocation2]   ;;  %s27_s29 = int_to_ptr.hbm [resolvable:$true] %s26_s29 }
   0x3   :  { %s28_s9 = sshll.u32 %s608_s30, 4  ;;  %s41_s12 = sshll.u32 %s716_s5, 4  ;;  %s29_s9 = int_to_ptr.vmem [resolvable:$true] %s28_s9  ;;  %s42_s12 = int_to_ptr.hbm [resolvable:$true] %s41_s12 }
   0x4   :  { %s609_s13 = smov 64   ;;  %s610_s14 = smov 4  }
   0x5   :  { %34 = dma.hbm_to_vmem [thread:$0]  %s27_s29, 1024, %s29_s9, [#allocation3], %s609_s13, %s609_s13, %s610_s14  }
   0x6   :  { %s611_s15 = smov [#allocation5]  }
   0x7   :  { %s43_s16 = sshll.u32 %s611_s15, 4  ;;  %s44_s16 = int_to_ptr.vmem [resolvable:$true] %s43_s16 }
   0x8   :  { %49 = dma.hbm_to_vmem [thread:$0]  %s42_s12, 1024, %s44_s16, [#allocation6], %s609_s13, %s609_s13, %s610_s14  }
   0x9   :  { %602 = dma.done.wait [#allocation3], 1024  }
   0xa   :  { %603 = vsyncadd [#allocation3], 4294966272 }
   0xb   :  { %604 = dma.done.wait [#allocation6], 1024  }
   0xc   :  { %605 = vsyncadd [#allocation6], 4294966272  ;;  %v494_v0 = vld [vmem:[%s712_s1 + $0x38] sm:$0xff]  ;;  %v493_v1 = vld [vmem:[%s712_s1 + $0x30] sm:$0xff]  ;;  %s377_s18 = sshll.u32 %s719_s8, 4  ;;  %s613_s19 = smov 128   ;;  %s378_s18 = int_to_ptr.hbm [resolvable:$true] %s377_s18 }
   0xd   :  { %133 = vmatpush.bf16.msra.mxu0 %v494_v0  ;;  %v502_v2 = vld [vmem:[#allocation2 + $0x38] sm:$0xff]  ;;  %v501_v3 = vld [vmem:[#allocation2 + $0x30] sm:$0xff]  ;;  %v492_v4 = vld [vmem:[%s712_s1 + $0x28] sm:$0xff]  ;;  %s614_s5 = smov 8  }
   0xe   :  { %218 = vmatpush.bf16.msra.mxu1 %v502_v2  ;;  %v500_v5 = vld [vmem:[#allocation2 + $0x28] sm:$0xff]  ;;  %v491_v6 = vld [vmem:[%s712_s1 + $0x20] sm:$0xff]  ;;  %v490_v8 = vld [vmem:[%s712_s1 + $0x18] sm:$0xff] }
   0xf   :  { %v499_v7 = vld [vmem:[#allocation2 + $0x20] sm:$0xff]  ;;  %v489_v9 = vld [vmem:[%s712_s1 + $0x10] sm:$0xff]  ;;  %v488_v10 = vld [vmem:[%s712_s1 + $0x8] sm:$0xff] }
  0x10   :  { %v487_v11 = vld [vmem:[%s712_s1] sm:$0xff]  ;;  %v63_v13 = vld [vmem:[%s711_s0 + $0x8] sm:$0xff]  ;;  %v498_v15 = vld [vmem:[#allocation2 + $0x18] sm:$0xff] }
  0x11   :  { %134 = vmatpush.bf16.msra.mxu0 %v493_v1  ;;  %v62_v12 = vld [vmem:[%s711_s0] sm:$0xff]  ;;  %v497_v16 = vld [vmem:[#allocation2 + $0x10] sm:$0xff]  ;;  %v496_v17 = vld [vmem:[#allocation2 + $0x8] sm:$0xff] }
  0x12   :  { %219 = vmatpush.bf16.msra.mxu1 %v501_v3  ;;  %v81_v14 = vpack.c.bf16 %v63_v13, %v62_v12  ;;  %v495_v18 = vld [vmem:[#allocation2] sm:$0xff]  ;;  %v510_v19 = vld [vmem:[#allocation5 + $0x38] sm:$0xff]  ;;  %v509_v20 = vld [vmem:[#allocation5 + $0x30] sm:$0xff] }
  0x13   :  { %303 = vmatpush.bf16.msra.mxu2 %v510_v19  ;;  %v508_v21 = vld [vmem:[#allocation5 + $0x28] sm:$0xff]  ;;  %v507_v22 = vld [vmem:[#allocation5 + $0x20] sm:$0xff]  ;;  %v506_v31 = vld [vmem:[#allocation5 + $0x18] sm:$0xff] }
  0x14   :  { %v518_v24 = vld [vmem:[%s713_s2] ss:$0 sm:$0xff]  ;;  %v505_v32 = vld [vmem:[#allocation5 + $0x10] sm:$0xff]  ;;  %v504_v33 = vld [vmem:[#allocation5 + $0x8] sm:$0xff] }
  0x15   :  { %135 = vmatpush.bf16.msra.mxu0 %v492_v4  ;;  %v503_v34 = vld [vmem:[#allocation5] sm:$0xff] }
  0x16   :  { %220 = vmatpush.bf16.msra.mxu1 %v500_v5  ;;  %v519_v36 = vld [vmem:[%s715_s4] ss:$0 sm:$0xff]  ;;  %s612_s4 = smov [#allocation7]  }
  0x17   :  { %304 = vmatpush.bf16.msra.mxu2 %v509_v20  ;;  %v520_v43 = vld [vmem:[%s717_s6] ss:$0 sm:$0xff]  ;;  %s375_s6 = sshll.u32 %s612_s4, 4  ;;  %s376_s6 = int_to_ptr.vmem [resolvable:$true] %s375_s6 }
  0x18   :  { %v521_v46 = vld [vmem:[%s718_s7] ss:$0 sm:$0xff] }
  0x19   :  { %136 = vmatpush.bf16.msra.mxu0 %v491_v6 }
  0x1a   :  { %221 = vmatpush.bf16.msra.mxu1 %v499_v7 }
  0x1b   :  { %305 = vmatpush.bf16.msra.mxu2 %v508_v21 }
  0x1d   :  { %137 = vmatpush.bf16.msra.mxu0 %v490_v8 }
  0x1e   :  { %222 = vmatpush.bf16.msra.mxu1 %v498_v15 }
  0x1f   :  { %306 = vmatpush.bf16.msra.mxu2 %v507_v22 }
  0x21   :  { %138 = vmatpush.bf16.msra.mxu0 %v489_v9 }
  0x22   :  { %223 = vmatpush.bf16.msra.mxu1 %v497_v16 }
  0x23   :  { %307 = vmatpush.bf16.msra.mxu2 %v506_v31 }
  0x25   :  { %139 = vmatpush.bf16.msra.mxu0 %v488_v10 }
  0x26   :  { %224 = vmatpush.bf16.msra.mxu1 %v496_v17 }
  0x27   :  { %308 = vmatpush.bf16.msra.mxu2 %v505_v32 }
  0x29   :  { %140 = vmatpush.bf16.msra.mxu0 %v487_v11 }
  0x2a   :  { %225 = vmatpush.bf16.msra.mxu1 %v495_v18 }
  0x2b   :  { %309 = vmatpush.bf16.msra.mxu2 %v504_v33 }
  0x2c   :  { %141 = vmatmul.bf16.vlgmr.msra.gmra.mxu0 %v81_v14 }
  0x2f   :  { %310 = vmatpush.bf16.msra.mxu2 %v503_v34 }
  0xa9   :  { %v142_v23 = vpop.f32.mrf.mxu0 }
  0xaa   :  { %v143_v25 = vadd.f32 %v518_v24, %v142_v23 }
  0xac   :  { %v147_v28 = vmax.f32 %v143_v25, 0.0 }
  0xb1   :  { %v144_v26 = vpop.f32.mrf.mxu0 }
  0xb2   :  { %v145_v27 = vadd.f32 %v518_v24, %v144_v26 }
  0xb4   :  { %v148_v29 = vmax.f32 %v145_v27, 0.0 }
  0xb6   :  { %v166_v30 = vpack.c.bf16 %v148_v29, %v147_v28 }
  0xb8   :  { %226 = vmatmul.bf16.vlgmr.msra.gmra.mxu1 %v166_v30 }
 0x135   :  { %v227_v35 = vpop.f32.mrf.mxu1 }
 0x136   :  { %v228_v37 = vadd.f32 %v519_v36, %v227_v35 }
 0x138   :  { %v232_v40 = vmax.f32 %v228_v37, 0.0 }
 0x13d   :  { %v229_v38 = vpop.f32.mrf.mxu1 }
 0x13e   :  { %v230_v39 = vadd.f32 %v519_v36, %v229_v38 }
 0x140   :  { %v233_v41 = vmax.f32 %v230_v39, 0.0 }
 0x142   :  { %v251_v42 = vpack.c.bf16 %v233_v41, %v232_v40 }
 0x144   :  { %311 = vmatmul.bf16.vlgmr.msra.gmra.mxu2 %v251_v42 }
 0x1c7   :  { %v312_v44 = vpop.f32.mrf.mxu2 }
 0x1c8   :  { %v313_v45 = vadd.f32 %v520_v43, %v312_v44 }
 0x1ca   :  { %v317_v47 = vmax.f32 %v313_v45, 0.0 }
 0x1cc   :  { %v323_v48 = vadd.f32 %v521_v46, %v317_v47 }
 0x1ce   :  { %325 = vmax.xlane.f32.xlu0 %v323_v48 }
 0x1cf   :  { %v314_v49 = vpop.f32.mrf.mxu2 }
 0x1d0   :  { %v315_v50 = vadd.f32 %v520_v43, %v314_v49 }
 0x1d2   :  { %v318_v51 = vmax.f32 %v315_v50, 0.0 }
 0x1d4   :  { %v324_v52 = vadd.f32 %v521_v46, %v318_v51 }
 0x1d6   :  { %327 = vmax.xlane.f32.xlu0 %v324_v52 }
 0x241   :  { %v326_v53 = vpop.xlane.xlu0 %325 }
 0x242   :  { %v329_v54 = vsub.f32 %v323_v48, %v326_v53 }
 0x244   :  { %v331_v55 = vmul.f32 1.442695, %v329_v54 }
 0x246   :  { %522 = vpow2.f32 %v331_v55 }
 0x249   :  { %v328_v56 = vpop.xlane.xlu0 %327 }
 0x24a   :  { %v330_v57 = vsub.f32 %v324_v52, %v328_v56 }
 0x24c   :  { %v523_v58 = vpop.eup %522  ;;  %v333_v59 = vmul.f32 1.442695, %v330_v57 }
 0x24d   :  { %335 = vadd.xlane.f32.xlu1 %v523_v58 }
 0x24e   :  { %524 = vpow2.f32 %v333_v59 }
 0x254   :  { %v525_v60 = vpop.eup %524 }
 0x255   :  { %337 = vadd.xlane.f32.xlu1 %v525_v60 }
 0x2c0   :  { %v336_v61 = vpop.xlane.xlu1 %335 }
 0x2c1   :  { %526 = vrcp.f32 %v336_v61  ;;  %v350_v2 = vand.u32 2147483648, %v336_v61  ;;  %v348_v4 = vand.u32 2147483647, %v336_v61  ;;  %vm344_vm1 = vweird.f32 %v336_v61 }
 0x2c3   :  { %v351_v7 = vor.u32 1.1754944e-38, %v350_v2  ;;  %vm349_vm3 = vcmp.eq.f32.partialorder %v348_v4, 8.507059e+37 }
 0x2c7   :  { %v527_v62 = vpop.eup %526 }
 0x2c8   :  { %v340_v63 = vmul.f32 %v527_v62, %v336_v61  ;;  %v338_v0 = vpop.xlane.xlu1 %337  ;;  %vm345_vm0 = vweird.f32 %v527_v62 }
 0x2c9   :  { %528 = vrcp.f32 %v338_v0  ;;  %vm346_vm2 = vmor %vm344_vm1, %vm345_vm0  ;;  %v365_v13 = vand.u32 2147483648, %v338_v0  ;;  %v363_v15 = vand.u32 2147483647, %v338_v0  ;;  %vm359_vm5 = vweird.f32 %v338_v0 }
 0x2ca   :  { %v341_v1 = vsub.f32 1.0, %v340_v63 }
 0x2cb   :  { %v366_v17 = vor.u32 1.1754944e-38, %v365_v13  ;;  %vm364_vm7 = vcmp.eq.f32.partialorder %v363_v15, 8.507059e+37 }
 0x2cc   :  { %v342_v3 = vmul.f32 %v527_v62, %v341_v1 }
 0x2ce   :  { %v343_v5 = vadd.f32 %v527_v62, %v342_v3 }
 0x2cf   :  { %v529_v6 = vpop.eup %528 }
 0x2d0   :  { %v347_v8 = vsel %vm346_vm2, %v527_v62, %v343_v5  ;;  %v355_v9 = vmul.f32 %v529_v6, %v338_v0  ;;  %vm360_vm4 = vweird.f32 %v529_v6 }
 0x2d1   :  { %v352_v10 = vsel %vm349_vm3, %v351_v7, %v347_v8  ;;  %vm361_vm6 = vmor %vm359_vm5, %vm360_vm4 }
 0x2d2   :  { %v353_v11 = vmul.f32 %v523_v58, %v352_v10  ;;  %v356_v12 = vsub.f32 1.0, %v355_v9 }
 0x2d4   :  { %369 = vst [vmem:[#allocation7] sm:$0xff] %v353_v11  ;;  %v357_v14 = vmul.f32 %v529_v6, %v356_v12 }
 0x2d6   :  { %v358_v16 = vadd.f32 %v529_v6, %v357_v14 }
 0x2d8   :  { %v362_v18 = vsel %vm361_vm6, %v529_v6, %v358_v16 }
 0x2d9   :  { %v367_v19 = vsel %vm364_vm7, %v366_v17, %v362_v18 }
 0x2da   :  { %v368_v20 = vmul.f32 %v525_v60, %v367_v19 }
 0x2dc   :  { %370 = vst [vmem:[#allocation7 + $0x8] sm:$0xff] %v368_v20 }
 0x2dd   :  { %383 = dma.vmem_to_hbm [thread:$0]  %s376_s6, 256, %s378_s18, [#allocation4], %s613_s19, %s613_s19, %s614_s5  }
 0x2de   :  { %606 = dma.done.wait [#allocation4], 256  }
 0x2df   :  { %607 = vsyncadd [#allocation4], 4294967040 }
 0x2e0   :  { %388 = vsyncpa [#allocation3], 1 }
 0x2e1   :  { %389 = vsyncpa [#allocation6], 1 }
 0x2e2   :  { %390 = vsyncpa [#allocation4], 1 }

</bundles_post_ra>
